<compile_context>
chip_gen: v7x
topology: tpu7x:2x2x1
jax: 0.10.0
libtpu: 0.0.40
codegen_flags: <defaults>
</compile_context>

<pallas_src>
import jax
import jax.numpy as jnp
from jax.experimental import pallas as pl
from jax.experimental.pallas import tpu as pltpu


# ----------------------------- kernel -------------------------------------- #

def _normalize_kernel(x_ref, o_ref):
    # (x - 0.5) / 0.5  ==  (x - 0.5) * 2.0   (bit-exact in floating point)
    o_ref[...] = ((x_ref[...] - 0.5) * 2.0).astype(o_ref.dtype)


# --------------------------- wrapper / tiling ------------------------------- #

_LANES = (2048, 1024, 512, 256, 128)


def _choose_lane(n):
    """Pick the widest 128-multiple lane width, preferring exact division."""
    # Widest lane that divides n exactly AND still leaves >= 8 rows.
    for lane in _LANES:
        if n % lane == 0 and n // lane >= 8:
            return lane
    # Widest lane that at least divides n exactly (tiny inputs).
    for lane in _LANES:
        if n % lane == 0:
            return lane
    # No exact fit: fall back to 128 lanes with tail padding.
    return 128


def normalize(x, *, max_tile_bytes=4 << 20):
    """(x - 0.5) / 0.5 for an arbitrarily shaped array, streamed through VMEM."""
    orig_shape = x.shape
    dtype = x.dtype
    itemsize = jnp.dtype(dtype).itemsize

    flat = x.reshape(-1)
    n = flat.size
    lane = _choose_lane(n)

    # Pad only if no lane width divides n (rare; costs one extra HBM copy).
    padded_n = pl.cdiv(n, lane) * lane
    if padded_n != n:
        flat = jnp.pad(flat, (0, padded_n - n))
    rows = padded_n // lane
    x2d = flat.reshape(rows, lane)

    # Per-tile rows: largest multiple of 8 whose single-buffer footprint stays
    # under max_tile_bytes. If that covers the whole slab, use the full row dim
    # (a full-extent block is always legal, even if rows % 8 != 0).
    tile_rows = (max_tile_bytes // (lane * itemsize)) // 8 * 8
    tile_rows = max(8, tile_rows)
    if tile_rows >= rows:
        tile_rows = rows                      # single-tile / full-extent block
    grid = (pl.cdiv(rows, tile_rows),)        # ragged last block is masked

    out2d = pl.pallas_call(
        _normalize_kernel,
        out_shape=jax.ShapeDtypeStruct((rows, lane), dtype),
        grid_spec=pltpu.PrefetchScalarGridSpec(
            num_scalar_prefetch=0,
            grid=grid,
            in_specs=[pl.BlockSpec((tile_rows, lane), lambda i: (i, 0))],
            out_specs=pl.BlockSpec((tile_rows, lane), lambda i: (i, 0)),
        ),
        compiler_params=pltpu.CompilerParams(
            dimension_semantics=("parallel",),      # megacore split on v7x
            vmem_limit_bytes=32 * 1024 * 1024,      # explicit, v7x-safe budget
        ),
        cost_estimate=pl.CostEstimate(
            flops=2 * padded_n,                     # 1 sub + 1 mul per element
            transcendentals=0,
            bytes_accessed=2 * padded_n * itemsize,  # read + write
        ),
    )(x2d)

    if padded_n != n:
        return out2d.reshape(-1)[:n].reshape(orig_shape)
    return out2d.reshape(orig_shape)


normalize_jit = jax.jit(normalize, static_argnames=("max_tile_bytes",))


# -------------------------------- main -------------------------------------- #

if __name__ == "__main__":
    key = jax.random.PRNGKey(0)
    cases = [
        # (shape, max_tile_bytes)
        ((2, 4, 16, 16), 4 << 20),     # tiny, single tile, no padding
        ((2, 8, 64, 64), 64 * 1024),   # forces a multi-tile pipelined grid
        ((2, 8, 40, 40), 32 * 1024),   # ragged grid (rows not tile-aligned)
        ((3, 5, 7, 11), 4 << 20),      # awkward size -> lane-pad fallback path
    ]
    for i, (shape, tile_bytes) in enumerate(cases):
        x = jax.random.uniform(jax.random.fold_in(key, i), shape, jnp.float32)

        out = normalize_jit(x, max_tile_bytes=tile_bytes)
        out = jax.block_until_ready(out)

        ref = (x - 0.5) / 0.5
        assert out.shape == ref.shape, (out.shape, ref.shape)
        err = float(jnp.max(jnp.abs(out - ref)))
        assert err < 1e-6, f"max abs err {err} for shape {shape}"

    print("KERNEL_OK")
</pallas_src>

<mosaic_0001>
module attributes {stable_mosaic.version = 11 : i64} {
  func.func @_normalize_kernel(%arg0: i32, %arg1: memref<8x256xf32, #tpu.memory_space<vmem>>, %arg2: memref<8x256xf32, #tpu.memory_space<vmem>>) attributes {dimension_semantics = [#tpu.dimension_semantics<parallel>], iteration_bounds = array<i64: 1>, scalar_prefetch = 0 : i64, scratch_operands = 0 : i64, tpu.core_type = #tpu.core_type<tc>, window_params = [{transform_indices = @transform_0, window_bounds = array<i64: 8, 256>}, {transform_indices = @transform_1, window_bounds = array<i64: 8, 256>}]} {
    %c0 = arith.constant 0 : index
    %c0_0 = arith.constant 0 : index
    %0 = vector.load %arg1[%c0, %c0_0] : memref<8x256xf32, #tpu.memory_space<vmem>>, vector<8x256xf32>
    %cst = arith.constant 5.000000e-01 : f32
    %1 = vector.broadcast %cst : f32 to vector<8x256xf32>
    %2 = arith.subf %0, %1 : vector<8x256xf32>
    %cst_1 = arith.constant 2.000000e+00 : f32
    %3 = vector.broadcast %cst_1 : f32 to vector<8x256xf32>
    %4 = arith.mulf %2, %3 : vector<8x256xf32>
    %c0_2 = arith.constant 0 : index
    %c0_3 = arith.constant 0 : index
    %5 = vector.load %arg2[%c0_2, %c0_3] : memref<8x256xf32, #tpu.memory_space<vmem>>, vector<8x256xf32>
    tpu.vector_store %arg2[%c0_2, %c0_3], %4 {strides = array<i32>} : memref<8x256xf32, #tpu.memory_space<vmem>>, vector<8x256xf32>,
    return
  }
  func.func @transform_0(%arg0: i32) -> (i32, i32) {
    %c0_i32 = arith.constant 0 : i32
    %c0_i32_0 = arith.constant 0 : i32
    return %arg0, %c0_i32 : i32, i32
  }
  func.func @transform_1(%arg0: i32) -> (i32, i32) {
    %c0_i32 = arith.constant 0 : i32
    %c0_i32_0 = arith.constant 0 : i32
    return %arg0, %c0_i32 : i32, i32
  }
}

</mosaic_0001>

<bundles_post_ra>
// kernel: normalize.1
= control target key start
LH: loop header
LB: loop body
LE: loop exit
PB: predicated region body
PF: predicated region fallthrough
CT: control target
= control target key end

     0   :  { %s44_s0 = inlined_call_operand.vmem [shape: f32[8,256], index: 0, kind: input, shape index: {}]   ;;  %s45_s1 = inlined_call_operand.vmem [shape: f32[8,256], index: 1, kind: output, shape index: {}]  }
   0x1   :  { %v8_v0 = vld [vmem:[%s44_s0] sm:$0xff]  ;;  %v9_v1 = vld [vmem:[%s44_s0 + $0x8] sm:$0xff] }
   0x2   :  { %v20_v2 = vadd.f32 -0.5, %v8_v0  ;;  %v21_v3 = vadd.f32 -0.5, %v9_v1 }
   0x4   :  { %v12_v4 = vmul.f32 2.0, %v20_v2  ;;  %v13_v5 = vmul.f32 2.0, %v21_v3 }
   0x6   :  { %14 = vst [vmem:[%s45_s1] sm:$0xff] %v12_v4  ;;  %15 = vst [vmem:[%s45_s1 + $0x8] sm:$0xff] %v13_v5 }

</bundles_post_ra>
